<compile_context>
chip_gen: v7x
topology: tpu7x:2x2x1
jax: 0.10.0
libtpu: 0.0.40
codegen_flags: <defaults>
</compile_context>

<pallas_src>
import functools
import math

import jax
import jax.numpy as jnp
from jax import lax
from jax.experimental import pallas as pl
from jax.experimental.pallas import tpu as pltpu

# ------------------------- problem sizes (small) -------------------------
B = 2          # batch
F_IN = 16      # raw condition feature dim per token
N_COND = 8     # tokens per condition type
N_PROMPT = 8   # prompt tokens
D = 32         # hidden size

NEG_INF = -1e30


def _round8(n):
    return ((n + 7) // 8) * 8


@functools.lru_cache(maxsize=None)
def _slab_layout(n_types, batch, n_cond, n_prompt, d, f_in):
    """Row-block layout of the single packed parameter slab.

    Every tensor starts at lane 0 and at a sublane offset that is a multiple of
    8, so the static in-kernel slices stay within (8,128) tile rows and need no
    relayout."""
    td = n_types * d
    nk = n_types * batch * n_cond
    nq = batch * n_prompt
    width = max(td, d, nk)
    order = [
        ("w1",    (f_in, td)),   # per-type layer-1 weights, concat along lanes
        ("b1",    (1, td)),      # per-type layer-1 bias,   concat along lanes
        ("emask", (nk, td)),     # kv-row-type x lane-type select mask (0/1)
        ("w2",    (td, d)),      # per-type layer-2 weights, stacked along sublanes
        ("b2",    (nk, d)),      # layer-2 bias broadcast to kv rows
        ("pe",    (nq, d)),      # learned PE pre-tiled over the batch
        ("wqk",   (d, d)),       # Wq @ Wk^T / sqrt(D)   (softmax scale folded)
        ("wvo",   (d, d)),       # Wv @ Wo
        ("bias",  (nq, nk)),     # additive block-diagonal attention mask
    ]
    offs = {}
    row = 0
    for name, shp in order:
        offs[name] = (row, shp)
        row += _round8(shp[0])
    return offs, _round8(row), width


@functools.lru_cache(maxsize=None)
def _make_fused_forward(n_types, batch, n_cond, n_prompt, d, f_in):
    """Single gridless pallas_call: both condition encoders + the condition
    cross-attention fused, all parameters carved from ONE VMEM slab."""
    offs, _total_rows, _width = _slab_layout(n_types, batch, n_cond, n_prompt, d, f_in)
    nq = batch * n_prompt

    def cut(p_ref, name):
        r0, (h, w) = offs[name]
        return p_ref[r0:r0 + h, 0:w]

    def kernel(x_ref, prompt_ref, p_ref, o_ref):
        # ---- both per-type token-wise MLP encoders in TWO MXU passes ----
        x = x_ref[...]                                                # [T*B*Nc, F_IN]
        h = jnp.dot(x, cut(p_ref, "w1"),
                    preferred_element_type=jnp.float32) + cut(p_ref, "b1")
        h = jnp.maximum(h, 0.0) * cut(p_ref, "emask")                 # [T*B*Nc, T*D]
        kv = jnp.dot(h, cut(p_ref, "w2"),
                     preferred_element_type=jnp.float32) + cut(p_ref, "b2")
        # kv rows are in (type, batch, token) order; softmax attention is
        # order-invariant given the per-batch block-diagonal bias below.

        # ---- single-head cross-attention, whole batch in one shot ----
        q_in = prompt_ref[...] + cut(p_ref, "pe")                     # [B*Nq, D]
        # scores: (q Wq)(kv Wk)^T / sqrt(D) == q (WqWk^T/sqrt(D)) kv^T ; contract
        # the LAST dims so kv is consumed without a materialized transpose.
        qp = jnp.dot(q_in, cut(p_ref, "wqk"), preferred_element_type=jnp.float32)
        s = lax.dot_general(qp, kv, (((1,), (1,)), ((), ())),
                            preferred_element_type=jnp.float32)       # [B*Nq, T*B*Nc]
        s = s + cut(p_ref, "bias")            # precomputed block-diagonal mask
        s = s - jnp.max(s, axis=-1, keepdims=True)
        p = jnp.exp(s)
        p = p * pl.reciprocal(jnp.sum(p, axis=-1, keepdims=True), approx=True)

        # values: (p kv Wv) Wo == p kv (WvWo)   (wvo folded at init)
        ctx = jnp.dot(p, kv, preferred_element_type=jnp.float32)      # [B*Nq, D]
        out = q_in + jnp.dot(ctx, cut(p_ref, "wvo"),
                             preferred_element_type=jnp.float32)
        o_ref[...] = out.astype(o_ref.dtype)

    vmem = pl.BlockSpec(memory_space=pltpu.MemorySpace.VMEM)
    return pl.pallas_call(
        kernel,
        out_shape=jax.ShapeDtypeStruct((nq, d), jnp.float32),
        in_specs=[vmem, vmem, vmem],
        out_specs=vmem,
    )


# ------------------------- module wrapper -------------------------

class ConditionTransformerPallas:
    """JAX/Pallas re-implementation of ConditionTransformer.forward."""

    def __init__(self, cond_type_names, key):
        # _config_cond_types
        self.cond_types = [t for t in cond_type_names if "OneText" not in t]
        self.text_types = [t for t in cond_type_names if "OneText" in t]
        self.use_pe = True

        # _config_condition_encoders : one 2-layer MLP encoder per condition type
        n_enc_keys = 4 * len(self.cond_types)
        keys = jax.random.split(key, n_enc_keys + 5)
        self.enc_params = {}
        for i, t in enumerate(self.cond_types):
            k1, k2, k3, k4 = keys[4 * i:4 * i + 4]
            w1 = 0.05 * jax.random.normal(k1, (F_IN, D), jnp.float32)
            b1 = 0.05 * jax.random.normal(k2, (D,), jnp.float32)
            w2 = 0.05 * jax.random.normal(k3, (D, D), jnp.float32)
            b2 = 0.05 * jax.random.normal(k4, (D,), jnp.float32)
            self.enc_params[t] = (w1, b1, w2, b2)

        # _config_condition_attn : single-head cross-attention + learned PE
        ko = keys[n_enc_keys:]
        self.wq = 0.05 * jax.random.normal(ko[0], (D, D), jnp.float32)
        self.wk = 0.05 * jax.random.normal(ko[1], (D, D), jnp.float32)
        self.wv = 0.05 * jax.random.normal(ko[2], (D, D), jnp.float32)
        self.wo = 0.05 * jax.random.normal(ko[3], (D, D), jnp.float32)
        self.pe = 0.02 * jax.random.normal(ko[4], (1, N_PROMPT, D), jnp.float32)
        if not self.use_pe:
            self.pe = jnp.zeros_like(self.pe)

        # Folded attention weights (once, off the hot path); softmax scale folded.
        self.wqk = (self.wq @ self.wk.T) / math.sqrt(D)
        self.wvo = self.wv @ self.wo

        # Packed parameter slab for the default config (all types, default shapes);
        # other (types, B, Nc, Nq) combos are built lazily and cached.
        self._slab_cache = {}
        if self.cond_types:
            self._get_slab(tuple(self.cond_types), B, N_COND, N_PROMPT)

        # TODO(synk): text_attns / OneText* condition path not instantiated — no
        # OneText condition types are configured, so forward takes the
        # `prompt_loss = None` branch, exactly as in the reference module.

    # ---- packed parameter slab ----
    def _get_slab(self, present, batch, n_cond, n_prompt):
        key = (present, batch, n_cond, n_prompt)
        if key not in self._slab_cache:
            self._slab_cache[key] = self._build_slab(present, batch, n_cond, n_prompt)
        return self._slab_cache[key]

    def _build_slab(self, present, batch, n_cond, n_prompt):
        """Pack all params + compile-time constants into ONE (8,128)-aligned f32
        slab -> a single HBM->VMEM DMA per kernel call."""
        n_types = len(present)
        offs, total_rows, width = _slab_layout(n_types, batch, n_cond, n_prompt, D, F_IN)
        nk = n_types * batch * n_cond
        nq = batch * n_prompt
        td = n_types * D
        bn = batch * n_cond

        w1_cat = jnp.concatenate([self.enc_params[t][0] for t in present], axis=1)      # [F_IN, T*D]
        b1_cat = jnp.concatenate([self.enc_params[t][1] for t in present], axis=0)[None, :]
        w2_stk = jnp.concatenate([self.enc_params[t][2] for t in present], axis=0)      # [T*D, D]
        b2_row = jnp.concatenate(
            [jnp.tile(self.enc_params[t][3][None, :], (bn, 1)) for t in present], axis=0)  # [nk, D]

        # encoder type-select mask: kv row r (type r//bn) keeps only lanes of its type
        row_type = jnp.arange(nk)[:, None] // bn
        lane_type = jnp.arange(td)[None, :] // D
        emask = (row_type == lane_type).astype(jnp.float32)                              # [nk, T*D]

        pe_tiled = jnp.tile(self.pe[0], (batch, 1))                                      # [B*Nq, D]

        # additive block-diagonal mask: query batch must equal kv batch
        q_b = jnp.arange(nq)[:, None] // n_prompt
        k_b = (jnp.arange(nk)[None, :] // n_cond) % batch
        attn_bias = jnp.where(q_b == k_b, 0.0, NEG_INF).astype(jnp.float32)              # [nq, nk]

        parts = {"w1": w1_cat, "b1": b1_cat, "emask": emask, "w2": w2_stk,
                 "b2": b2_row, "pe": pe_tiled, "wqk": self.wqk, "wvo": self.wvo,
                 "bias": attn_bias}
        slab = jnp.zeros((total_rows, width), jnp.float32)
        for name, arr in parts.items():
            r0, (h, w) = offs[name]
            assert arr.shape == (h, w), (name, arr.shape, (h, w))
            slab = slab.at[r0:r0 + h, 0:w].set(arr)
        return slab

    # ---- forward ----
    def forward(self, condition_data, prompt_emd):
        Bx, Nq, _ = prompt_emd.shape
        if len(self.cond_types) > 0:
            present = tuple(t for t in self.cond_types
                            if t in condition_data
                            and condition_data[t]["input"].shape[1] > 0)
            xs = [condition_data[t]["input"] for t in present]
            n_cond = xs[0].shape[1]
            assert all(x.shape[1] == n_cond for x in xs)

            slab = self._get_slab(present, Bx, n_cond, Nq)
            if len(xs) == 1:
                x_stacked = xs[0].reshape(Bx * n_cond, xs[0].shape[-1])
            else:
                x_stacked = jnp.concatenate(
                    [x.reshape(Bx * n_cond, x.shape[-1]) for x in xs], axis=0)

            call = _make_fused_forward(len(present), Bx, n_cond, Nq, D, F_IN)
            out_flat = call(x_stacked, prompt_emd.reshape(Bx * Nq, D), slab)
            prompt_condition_emd = out_flat.reshape(Bx, Nq, D)
        else:
            prompt_condition_emd = prompt_emd

        if len(self.text_types) > 0 and self.text_types[0] in condition_data:
            raise NotImplementedError  # never reached with this config
        else:
            # reference module prints: "No condition data for text condition transformer"
            prompt_loss = None
        return prompt_condition_emd, prompt_loss


# ------------------------- reference + main -------------------------

def _reference_forward(model, condition_data, prompt_emd):
    """Pure-JAX reference (unfolded weights, per-type encoders) for correctness."""
    emds = []
    for t in model.cond_types:
        x = condition_data[t]["input"]
        w1, b1, w2, b2 = model.enc_params[t]
        h = jnp.maximum(x @ w1 + b1, 0.0)
        emds.append(h @ w2 + b2)
    kv = jnp.concatenate(emds, axis=1)
    q_in = prompt_emd + model.pe
    q = q_in @ model.wq
    k = kv @ model.wk
    v = kv @ model.wv
    s = jnp.einsum("bqd,bkd->bqk", q, k) / math.sqrt(D)
    p = jax.nn.softmax(s, axis=-1)
    ctx = jnp.einsum("bqk,bkd->bqd", p, v)
    return q_in + ctx @ model.wo


if __name__ == "__main__":
    key = jax.random.PRNGKey(0)
    k_param, k_a, k_b, k_p = jax.random.split(key, 4)

    model = ConditionTransformerPallas(["goal_point", "traj_hint"], k_param)

    condition_data = {
        "goal_point": {"input": jax.random.normal(k_a, (B, N_COND, F_IN), jnp.float32)},
        "traj_hint":  {"input": jax.random.normal(k_b, (B, N_COND, F_IN), jnp.float32)},
    }
    prompt_emd = jax.random.normal(k_p, (B, N_PROMPT, D), jnp.float32)

    out, loss = model.forward(condition_data, prompt_emd)
    out = jax.block_until_ready(out)

    ref = _reference_forward(model, condition_data, prompt_emd)
    assert out.shape == (B, N_PROMPT, D)
    assert loss is None
    assert jnp.allclose(out, ref, atol=1e-3, rtol=1e-3), \
        float(jnp.max(jnp.abs(out - ref)))

    print("KERNEL_OK")
</pallas_src>

<mosaic_0001>
module attributes {stable_mosaic.version = 11 : i64} {
  func.func @kernel(%arg0: memref<32x16xf32, #tpu.memory_space<vmem>>, %arg1: memref<16x32xf32, #tpu.memory_space<vmem>>, %arg2: memref<248x64xf32, #tpu.memory_space<vmem>>, %arg3: memref<16x32xf32, #tpu.memory_space<vmem>>) attributes {dimension_semantics = [], scalar_prefetch = 0 : i64, scratch_operands = 0 : i64, tpu.core_type = #tpu.core_type<tc>} {
    %c0 = arith.constant 0 : index
    %c0_0 = arith.constant 0 : index
    %0 = vector.load %arg0[%c0, %c0_0] : memref<32x16xf32, #tpu.memory_space<vmem>>, vector<32x16xf32>
    %c0_1 = arith.constant 0 : index
    %c0_2 = arith.constant 0 : index
    %1 = vector.load %arg2[%c0_1, %c0_2] : memref<248x64xf32, #tpu.memory_space<vmem>>, vector<16x64xf32>
    %cst = arith.constant dense<0.000000e+00> : vector<32x64xf32>
    %2 = tpu.matmul %0, %1, %cst {dimension_numbers = #tpu.dot_dimension_numbers<[1], [0], [0], [1], [0, 0, 1, 1], [], []>} : vector<32x16xf32>, vector<16x64xf32>, vector<32x64xf32> -> vector<32x64xf32>
    %c16 = arith.constant 16 : index
    %c0_3 = arith.constant 0 : index
    %3 = vector.load %arg2[%c16, %c0_3] : memref<248x64xf32, #tpu.memory_space<vmem>>, vector<1x64xf32>
    %4 = vector.broadcast %3 : vector<1x64xf32> to vector<32x64xf32>
    %5 = arith.addf %2, %4 : vector<32x64xf32>
    %cst_4 = arith.constant 0.000000e+00 : f32
    %6 = vector.broadcast %cst_4 : f32 to vector<32x64xf32>
    %7 = arith.maximumf %5, %6 : vector<32x64xf32>
    %c24 = arith.constant 24 : index
    %c0_5 = arith.constant 0 : index
    %8 = vector.load %arg2[%c24, %c0_5] : memref<248x64xf32, #tpu.memory_space<vmem>>, vector<32x64xf32>
    %9 = arith.mulf %7, %8 : vector<32x64xf32>
    %c56 = arith.constant 56 : index
    %c0_6 = arith.constant 0 : index
    %10 = vector.load %arg2[%c56, %c0_6] : memref<248x64xf32, #tpu.memory_space<vmem>>, vector<64x32xf32>
    %cst_7 = arith.constant dense<0.000000e+00> : vector<32x32xf32>
    %11 = tpu.matmul %9, %10, %cst_7 {dimension_numbers = #tpu.dot_dimension_numbers<[1], [0], [0], [1], [0, 0, 1, 1], [], []>} : vector<32x64xf32>, vector<64x32xf32>, vector<32x32xf32> -> vector<32x32xf32>
    %c120 = arith.constant 120 : index
    %c0_8 = arith.constant 0 : index
    %12 = vector.load %arg2[%c120, %c0_8] : memref<248x64xf32, #tpu.memory_space<vmem>>, vector<32x32xf32>
    %13 = arith.addf %11, %12 : vector<32x32xf32>
    %c0_9 = arith.constant 0 : index
    %c0_10 = arith.constant 0 : index
    %14 = vector.load %arg1[%c0_9, %c0_10] : memref<16x32xf32, #tpu.memory_space<vmem>>, vector<16x32xf32>
    %c152 = arith.constant 152 : index
    %c0_11 = arith.constant 0 : index
    %15 = vector.load %arg2[%c152, %c0_11] : memref<248x64xf32, #tpu.memory_space<vmem>>, vector<16x32xf32>
    %16 = arith.addf %14, %15 : vector<16x32xf32>
    %c168 = arith.constant 168 : index
    %c0_12 = arith.constant 0 : index
    %17 = vector.load %arg2[%c168, %c0_12] : memref<248x64xf32, #tpu.memory_space<vmem>>, vector<32x32xf32>
    %cst_13 = arith.constant dense<0.000000e+00> : vector<16x32xf32>
    %18 = tpu.matmul %16, %17, %cst_13 {dimension_numbers = #tpu.dot_dimension_numbers<[1], [0], [0], [1], [0, 0, 1, 1], [], []>} : vector<16x32xf32>, vector<32x32xf32>, vector<16x32xf32> -> vector<16x32xf32>
    %cst_14 = arith.constant dense<0.000000e+00> : vector<16x32xf32>
    %19 = tpu.matmul %18, %13, %cst_14 {dimension_numbers = #tpu.dot_dimension_numbers<[1], [1], [0], [0], [0, 0, 1, 0], [], []>} : vector<16x32xf32>, vector<32x32xf32>, vector<16x32xf32> -> vector<16x32xf32>
    %c232 = arith.constant 232 : index
    %c0_15 = arith.constant 0 : index
    %20 = vector.load %arg2[%c232, %c0_15] : memref<248x64xf32, #tpu.memory_space<vmem>>, vector<16x32xf32>
    %21 = arith.addf %19, %20 : vector<16x32xf32>
    %cst_16 = arith.constant dense<0xFF800000> : vector<16xf32>
    %22 = vector.multi_reduction <maximumf>, %21, %cst_16 [1] : vector<16x32xf32> to vector<16xf32>
    %23 = vector.shape_cast %22 : vector<16xf32> to vector<16x1xf32>
    %24 = vector.broadcast %23 : vector<16x1xf32> to vector<16x32xf32>
    %25 = arith.subf %21, %24 : vector<16x32xf32>
    %26 = math.exp %25 : vector<16x32xf32>
    %cst_17 = arith.constant dense<0.000000e+00> : vector<16xf32>
    %27 = vector.multi_reduction <add>, %26, %cst_17 [1] : vector<16x32xf32> to vector<16xf32>
    %28 = vector.shape_cast %27 : vector<16xf32> to vector<16x1xf32>
    %29 = tpu.reciprocal %28 {approx = true} : vector<16x1xf32> -> vector<16x1xf32>
    %30 = vector.broadcast %29 : vector<16x1xf32> to vector<16x32xf32>
    %31 = arith.mulf %26, %30 : vector<16x32xf32>
    %cst_18 = arith.constant dense<0.000000e+00> : vector<16x32xf32>
    %32 = tpu.matmul %31, %13, %cst_18 {dimension_numbers = #tpu.dot_dimension_numbers<[1], [0], [0], [1], [0, 0, 1, 1], [], []>} : vector<16x32xf32>, vector<32x32xf32>, vector<16x32xf32> -> vector<16x32xf32>
    %c200 = arith.constant 200 : index
    %c0_19 = arith.constant 0 : index
    %33 = vector.load %arg2[%c200, %c0_19] : memref<248x64xf32, #tpu.memory_space<vmem>>, vector<32x32xf32>
    %cst_20 = arith.constant dense<0.000000e+00> : vector<16x32xf32>
    %34 = tpu.matmul %32, %33, %cst_20 {dimension_numbers = #tpu.dot_dimension_numbers<[1], [0], [0], [1], [0, 0, 1, 1], [], []>} : vector<16x32xf32>, vector<32x32xf32>, vector<16x32xf32> -> vector<16x32xf32>
    %35 = arith.addf %16, %34 : vector<16x32xf32>
    %c0_21 = arith.constant 0 : index
    %c0_22 = arith.constant 0 : index
    %36 = vector.load %arg3[%c0_21, %c0_22] : memref<16x32xf32, #tpu.memory_space<vmem>>, vector<16x32xf32>
    tpu.vector_store %arg3[%c0_21, %c0_22], %35 {strides = array<i32>} : memref<16x32xf32, #tpu.memory_space<vmem>>, vector<16x32xf32>,
    return
  }
}

</mosaic_0001>

<bundles_post_ra>
// kernel: tpu_custom_call.1
= control target key start
LH: loop header
LB: loop body
LE: loop exit
PB: predicated region body
PF: predicated region fallthrough
CT: control target
= control target key end

     0   :  { %vm26_vm0 = vcmask 130048   ;;  %s1045_s0 = inlined_call_operand.vmem [shape: f32[32,16], index: 0, kind: input, shape index: {}]   ;;  %s1046_s1 = inlined_call_operand.vmem [shape: f32[16,32], index: 1, kind: input, shape index: {}]   ;;  %s1047_s2 = inlined_call_operand.vmem [shape: f32[248,64], index: 2, kind: input, shape index: {}]   ;;  %s1048_s3 = inlined_call_operand.hbm [shape: f32[16,32], index: 3, kind: output, shape index: {}]  }
   0x1   :  { %v19_v0 = vld [vmem:[%s1047_s2] sm:$0xff]  ;;  %v20_v1 = vld [vmem:[%s1047_s2 + $0x8] sm:$0xff]  ;;  %v136_v4 = vld [vmem:[%s1047_s2 + $0x38] sm:$0xff] }
   0x2   :  { %v15_v2 = vld [vmem:[%s1045_s0] sm:$0xff]  ;;  %v780_v3 = vpack.c.bf16 %v20_v1, %v19_v0  ;;  %v138_v6 = vld [vmem:[%s1047_s2 + $0x48] sm:$0xff]  ;;  %v139_v8 = vld [vmem:[%s1047_s2 + $0x50] sm:$0xff] }
   0x3   :  { %708 = vmatprep.mubr.msk.f32.mxu0 %vm26_vm0, %v15_v2  ;;  %v137_v5 = vld [vmem:[%s1047_s2 + $0x40] sm:$0xff] }
   0x4   :  { %781 = vmatprep.subr.bf16.mxu0 %v780_v3  ;;  %v784_v7 = vpack.c.bf16 %v137_v5, %v136_v4 }
   0x5   :  { %8 = vsyncpa [#allocation3], 0  ;;  %783 = vmatpush3.bf16.msra.mxu0 %v780_v3  ;;  %v16_v9 = vld [vmem:[%s1045_s0 + $0x8] sm:$0xff]  ;;  %v788_v10 = vpack.c.bf16 %v139_v8, %v138_v6  ;;  %v17_v11 = vld [vmem:[%s1045_s0 + $0x10] sm:$0xff]  ;;  %vm256_vm1 = vcmask 261120   ;;  %vm148_vm2 = vcmask 523264  }
   0x6   :  { %785 = vmatprep.subr.bf16.mxu1 %v784_v7  ;;  %v18_v12 = vld [vmem:[%s1045_s0 + $0x18] sm:$0xff]  ;;  %v141_v14 = vld [vmem:[%s1047_s2 + $0x60] sm:$0xff]  ;;  %v142_v16 = vld [vmem:[%s1047_s2 + $0x68] sm:$0xff]  ;;  %s871_s29 = smov [#allocation2]  }
   0x7   :  { %787 = vmatpush3.bf16.msra.mxu1 %v784_v7  ;;  %v140_v13 = vld [vmem:[%s1047_s2 + $0x58] sm:$0xff]  ;;  %v143_v17 = vld [vmem:[%s1047_s2 + $0x70] sm:$0xff]  ;;  %v252_v19 = vld [vmem:[%s1047_s2 + $0xa8] sm:$0xff] }
   0x8   :  { %709 = vmatmul.mubr.msk.f32.vlgmr.msra.gmra.mrb[0].mxu0 %vm26_vm0, %v16_v9  ;;  %789 = vmatprep.subr.bf16.mxu1 %v788_v10  ;;  %v792_v15 = vpack.c.bf16 %v141_v14, %v140_v13  ;;  %v796_v18 = vpack.c.bf16 %v143_v17, %v142_v16  ;;  %v253_v20 = vld [vmem:[%s1047_s2 + $0xb0] sm:$0xff]  ;;  %v254_v21 = vld [vmem:[%s1047_s2 + $0xb8] sm:$0xff]  ;;  %v255_v23 = vld [vmem:[%s1047_s2 + $0xc0] sm:$0xff] }
   0x9   :  { %711 = vmatprep.mubr.msk.f32.mxu0 %vm26_vm0, %v17_v11  ;;  %v800_v22 = vpack.c.bf16 %v253_v20, %v252_v19  ;;  %v246_v24 = vld [vmem:[%s1046_s1] sm:$0xff]  ;;  %v248_v25 = vld [vmem:[%s1047_s2 + $0x98] sm:$0xff]  ;;  %v804_v26 = vpack.c.bf16 %v255_v23, %v254_v21  ;;  %v247_v28 = vld [vmem:[%s1046_s1 + $0x8] sm:$0xff]  ;;  %s630_s1 = sshll.u32 %s871_s29, 4  ;;  %s631_s1 = int_to_ptr.vmem [resolvable:$true] %s630_s1 }
   0xa   :  { %v958_v27 = vadd.f32 %v248_v25, %v246_v24  ;;  %v249_v29 = vld [vmem:[%s1047_s2 + $0xa0] sm:$0xff]  ;;  %v641_v31 = vld [vmem:[%s1047_s2 + $0x10] ss:$0 sm:$0xff]  ;;  %v128_v37 = vld [vmem:[%s1047_s2 + $0x18] sm:$0xff]  ;;  %p852_p1 = scmp.lt.s32.totalorder %s631_s1, %s631_s1 }
   0xb   :  { %791 = vmatpush3.bf16.msra.mxu1 %v788_v10  ;;  %801 = vmatprep.subr.bf16.mxu0 %v800_v22  ;;  %v968_v30 = vadd.f32 %v249_v29, %v247_v28  ;;  %v129_v38 = vld [vmem:[%s1047_s2 + $0x20] sm:$0xff]  ;;  %v131_v43 = vld [vmem:[%s1047_s2 + $0x30] sm:$0xff]  ;;  %v130_v48 = vld [vmem:[%s1047_s2 + $0x28] sm:$0xff] }
   0xc   :  { %712 = vmatmul.mubr.msk.f32.gmra.mrb[2].mxu0 %vm26_vm0, %v18_v12  ;;  %793 = vmatprep.subr.bf16.mxu1 %v792_v15  ;;  %v145_v54 = vld [vmem:[%s1047_s2 + $0x80] sm:$0xff]  ;;  %v144_v55 = vld [vmem:[%s1047_s2 + $0x78] sm:$0xff]  ;;  %v147_v60 = vld [vmem:[%s1047_s2 + $0x90] sm:$0xff] }
   0xd   :  { %803 = vmatpush3.bf16.msra.mxu0 %v800_v22  ;;  %744 = vmatprep.mubr.msk.f32.mxu0 %vm256_vm1, %v958_v27  ;;  %v146_v61 = vld [vmem:[%s1047_s2 + $0x88] sm:$0xff]  ;;  %vm809_vm3 = vmpackc.low %vm256_vm1, %vm256_vm1  ;;  %v339_v6 = vld [vmem:[%s1047_s2 + $0xf0] sm:$0xff] }
   0xe   :  { %805 = vmatprep.subr.bf16.mxu0 %v804_v26  ;;  %v338_v4 = vld [vmem:[%s1047_s2 + $0xe8] sm:$0xff]  ;;  %v537_v23 = vld [vmem:[%s1047_s2 + $0xd0] sm:$0xff] }
   0xf   :  { %795 = vmatpush3.bf16.msra.mxu1 %v792_v15  ;;  %v536_v22 = vld [vmem:[%s1047_s2 + $0xc8] sm:$0xff] }
  0x10   :  { %797 = vmatprep.subr.bf16.mxu1 %v796_v18  ;;  %v828_v24 = vpack.c.bf16 %v537_v23, %v536_v22 }
  0x11   :  { %807 = vmatpush3.bf16.msra.mxu0 %v804_v26 }
  0x13   :  { %799 = vmatpush3.bf16.msra.mxu1 %v796_v18 }
  0x14   :  { %745 = vmatmul.mubr.msk.f32.vlgmr.msra.gmra.mrb[4].mxu0 %vm256_vm1, %v968_v30 }
  0xdb   :  { %v710_v32 = vpop.f32.mrb[0].mxu0 }
  0xdc   :  { %v111_v33 = vadd.f32 %v710_v32, %v641_v31  ;;  %v105_v34 = vpop.f32.mrb[1].mxu0  ;;  %v539_v32 = vld [vmem:[%s1047_s2 + $0xe0] sm:$0xff] }
  0xdd   :  { %v106_v35 = vadd.f32 %v641_v31, %v105_v34 }
  0xde   :  { %v125_v36 = vmax.f32 %v111_v33, 0.0 }
  0xdf   :  { %v124_v39 = vmax.f32 %v106_v35, 0.0  ;;  %v713_v40 = vpop.f32.mrb[2].mxu0 }
  0xe0   :  { %v121_v41 = vadd.f32 %v713_v40, %v641_v31  ;;  %v115_v42 = vpop.f32.mrb[3].mxu0  ;;  %v133_v46 = vmul.f32 %v129_v38, %v125_v36 }
  0xe1   :  { %v116_v44 = vadd.f32 %v641_v31, %v115_v42  ;;  %v132_v45 = vmul.f32 %v128_v37, %v124_v39  ;;  %v538_v31 = vld [vmem:[%s1047_s2 + $0xd8] sm:$0xff]  ;;  %s847_s2 = scalar_lea.vmem %s631_s1, 256 }
  0xe2   :  { %v127_v47 = vmax.f32 %v121_v41, 0.0  ;;  %v832_v35 = vpack.c.bf16 %v539_v32, %v538_v31  ;;  %p848_p0 = scmp.ne.s32.totalorder %s631_s1, %s847_s2  ;;  %p853_p2 = scmp.lt.s32.totalorder %s847_s2, %s847_s2 }
  0xe3   :  { %v126_v49 = vmax.f32 %v116_v44, 0.0  ;;  %730 = vmatprep.mubr.msk.f32.mxu1 %vm148_vm2, %v132_v45 }
  0xe4   :  { %v135_v50 = vmul.f32 %v131_v43, %v127_v47  ;;  %731 = vmatmul.mubr.msk.f32.vlgmr.msra.gmra.mrb[0].mxu1 %vm148_vm2, %v133_v46  ;;  %p854_p3 = por %p853_p2, %p852_p1 }
  0xe5   :  { %v134_v51 = vmul.f32 %v130_v48, %v126_v49 }
  0xe6   :  { %p855_p4 = pnand %p854_p3, %p848_p0 }
  0xe7   :  { %733 = vmatprep.mubr.msk.f32.mxu1 %vm148_vm2, %v134_v51  ;;  %v746_v52 = vpop.f32.mrb[4].mxu0 }
  0xe8   :  { %734 = vmatmul.mubr.msk.f32.gmra.mrb[2].mxu1 %vm148_vm2, %v135_v50  ;;  %v329_v53 = vpop.f32.mrb[5].mxu0 }
  0xe9   :  { %755 = vmatprep.mubr.msk.f32.mxu0 %vm256_vm1, %v329_v53 }
 0x1b7   :  { %v732_v56 = vpop.f32.mrb[0].mxu1 }
 0x1b8   :  { %v233_v57 = vadd.f32 %v732_v56, %v145_v54  ;;  %v227_v58 = vpop.f32.mrb[1].mxu1 }
 0x1b9   :  { %v228_v59 = vadd.f32 %v227_v58, %v144_v55 }
 0x1bb   :  { %v808_v62 = vpack.c.bf16 %v233_v57, %v228_v59  ;;  %v735_v63 = vpop.f32.mrb[2].mxu1 }
 0x1bc   :  { %v243_v0 = vadd.f32 %v735_v63, %v147_v60  ;;  %v237_v1 = vpop.f32.mrb[3].mxu1 }
 0x1bd   :  { %v238_v2 = vadd.f32 %v237_v1, %v146_v61  ;;  %810 = vmatprep.subr.msk.bf16.mxu0 %vm809_vm3, %v808_v62  ;;  %821 = vmatprep.subr.bf16.mxu1 %v808_v62 }
 0x1be   :  { %813 = vmatpush3.bf16.xpose.msk.msra.mxu0 %vm809_vm3, %v808_v62  ;;  %823 = vmatpush3.bf16.msra.mxu1 %v808_v62 }
 0x1bf   :  { %v814_v3 = vpack.c.bf16 %v243_v0, %v238_v2 }
 0x1c1   :  { %825 = vmatprep.subr.bf16.mxu1 %v814_v3  ;;  %816 = vmatprep.subr.msk.bf16.mxu0 %vm809_vm3, %v814_v3 }
 0x1c2   :  { %827 = vmatpush3.bf16.msra.mxu1 %v814_v3 }
 0x1c3   :  { %829 = vmatprep.subr.bf16.mxu1 %v828_v24 }
 0x1c6   :  { %819 = vmatpush3.bf16.xpose.msk.msra.mxu0 %vm809_vm3, %v814_v3 }
 0x1cd   :  { %756 = vmatmul.mubr.msk.f32.vlgmr.msra.gmra.mrb[6].mxu0 %vm256_vm1, %v746_v52 }
 0x2a0   :  { %v757_v5 = vpop.f32.mrb[6].mxu0 }
 0x2a1   :  { %v424_v7 = vpop.f32.mrb[7].mxu0  ;;  %v430_v9 = vadd.f32 %v757_v5, %v339_v6 }
 0x2a2   :  { %v425_v8 = vadd.f32 %v424_v7, %v338_v4 }
 0x2a3   :  { %v436_v11 = vsel %vm256_vm1, %v430_v9, -inf }
 0x2a4   :  { %v433_v10 = vsel %vm256_vm1, %v425_v8, -inf }
 0x2a5   :  { %434 = vmax.xlane.f32.xlu0 %v433_v10 }
 0x2a9   :  { %437 = vmax.xlane.f32.xlu0 %v436_v11 }
 0x332   :  { %v435_v12 = vpop.xlane.xlu0 %434 }
 0x333   :  { %v439_v13 = vsub.f32 %v425_v8, %v435_v12 }
 0x335   :  { %v441_v14 = vmul.f32 1.442695, %v439_v13 }
 0x336   :  { %v438_v15 = vpop.xlane.xlu0 %437 }
 0x337   :  { %839 = vpow2.f32 %v441_v14  ;;  %v440_v16 = vsub.f32 %v430_v9, %v438_v15 }
 0x339   :  { %v443_v17 = vmul.f32 1.442695, %v440_v16 }
 0x33b   :  { %841 = vpow2.f32 %v443_v17 }
 0x341   :  { %v840_v18 = vpop.eup %839 }
 0x342   :  { %v445_v19 = vsel %vm256_vm1, %v840_v18, 0.0 }
 0x343   :  { %446 = vadd.xlane.f32.xlu1 %v445_v19 }
 0x345   :  { %v842_v20 = vpop.eup %841 }
 0x346   :  { %v448_v21 = vsel %vm256_vm1, %v842_v20, 0.0 }
 0x347   :  { %449 = vadd.xlane.f32.xlu1 %v448_v21 }
 0x3d0   :  { %v447_v25 = vpop.xlane.xlu1 %446 }
 0x3d1   :  { %843 = vrcp.f32 %v447_v25 }
 0x3d4   :  { %v450_v26 = vpop.xlane.xlu1 %449 }
 0x3d5   :  { %845 = vrcp.f32 %v450_v26 }
 0x3db   :  { %v844_v28 = vpop.eup %843 }
 0x3dc   :  { %v453_v29 = vmul.f32 %v844_v28, %v840_v18 }
 0x3de   :  { %766 = vmatprep.mubr.msk.f32.mxu1 %vm256_vm1, %v453_v29 }
 0x3df   :  { %v846_v33 = vpop.eup %845 }
 0x3e0   :  { %v454_v34 = vmul.f32 %v846_v33, %v842_v20 }
 0x3e2   :  { %767 = vmatmul.mubr.msk.f32.vlgmr.msra.gmra.mrb[4].mxu1 %vm256_vm1, %v454_v34 }
 0x3e3   :  { %831 = vmatpush3.bf16.msra.mxu1 %v828_v24 }
 0x3e4   :  { %833 = vmatprep.subr.bf16.mxu1 %v832_v35 }
 0x3e7   :  { %835 = vmatpush3.bf16.msra.mxu1 %v832_v35 }
 0x4b5   :  { %v768_v36 = vpop.f32.mrb[4].mxu1 }
 0x4b6   :  { %v527_v37 = vpop.f32.mrb[5].mxu1 }
 0x4b7   :  { %777 = vmatprep.mubr.msk.f32.mxu1 %vm256_vm1, %v527_v37 }
 0x4b8   :  { %778 = vmatmul.mubr.msk.f32.vlgmr.msra.gmra.mrb[6].mxu1 %vm256_vm1, %v768_v36 }
 0x58b   :  { %v779_v38 = vpop.f32.mrb[6].mxu1 }
 0x58c   :  { %v622_v39 = vadd.f32 %v779_v38, %v968_v30  ;;  %v612_v40 = vpop.f32.mrb[7].mxu1 }
 0x58d   :  { %v621_v41 = vadd.f32 %v612_v40, %v958_v27 }
 0x58e   :  { %624 = vst.msk [vmem:[#allocation2 + $0x8] sm:$0xff] %vm256_vm1, %v622_v39 }
 0x58f   :  { %623 = vst.msk [vmem:[#allocation2] sm:$0xff] %vm256_vm1, %v621_v41 }
 0x590   :  { %858 = shalt.err (!%p855_p4)
}
 0x591   :  { %s859_s5 = scalar_lea.hbm %s1048_s3, 256 }
 0x592   :  { %p860_p5 = scmp.ne.s32.totalorder %s1048_s3, %s859_s5  ;;  %p863_p6 = scmp.lt.u32.totalorder %s859_s5, %s1048_s3 }
 0x594   :  { %p865_p7 = pnand %p863_p6, %p860_p5 }
 0x596   :  { %868 = shalt.err (!%p865_p7)
}
 0x597   :  { %s872_s10 = smov 128   ;;  %s873_s11 = smov 8  }
 0x598   :  { %636 = dma.vmem_to_hbm [thread:$0]  %s631_s1, 256, %s1048_s3, [#allocation3], %s872_s10, %s872_s10, %s873_s11  }
 0x599   :  { %869 = dma.done.wait [#allocation3], 256  }
 0x59a   :  { %870 = vsyncadd [#allocation3], 4294967040 }
 0x59b   :  { %640 = vsyncpa [#allocation3], 1 }

</bundles_post_ra>
